<compile_context>
chip_gen: v7x
topology: tpu7x:2x2x1
jax: 0.10.0
libtpu: 0.0.40
codegen_flags: <defaults>
</compile_context>

<pallas_src>
import math
import functools

import jax
import jax.numpy as jnp
from jax import lax
from jax.experimental import pallas as pl
from jax.experimental.pallas import tpu as pltpu


# ---------------------------------------------------------------------------
# Kernel 1: fused QKV projection — runs once per token.
# ---------------------------------------------------------------------------
def _qkv_proj_kernel(x_ref, w_ref, o_ref):
    # x_ref : (1, tm, d_in)     bf16
    # w_ref : (d_in, 3*d_pad)   bf16   [Wq/sqrt(d_out) | Wk | Wv], zero-padded lanes
    # o_ref : (1, tm, 3*d_pad)  bf16   lane-dense
    o_ref[0] = jnp.dot(
        x_ref[0], w_ref[...], preferred_element_type=jnp.float32
    ).astype(o_ref.dtype)


# ---------------------------------------------------------------------------
# Kernel 2: flash-style causal attention with online softmax.
# ---------------------------------------------------------------------------
def _flash_attn_kernel(seed_ref, q_ref, k_ref, v_ref, o_ref,
                       m_sc, l_sc, acc_sc, *, dropout_rate, tq, tk):
    # seed_ref : SMEM (1,) int32 (scalar prefetch)
    # q_ref    : (1, tq, d_pad) bf16   pre-scaled by 1/sqrt(d_out)
    # k_ref    : (1, tk, d_pad) bf16
    # v_ref    : (1, tk, d_pad) bf16
    # o_ref    : (1, tq, d_pad) bf16
    # m_sc/l_sc: (tq, 1) f32  running max / running denominator
    # acc_sc   : (tq, d_pad) f32  unnormalized output accumulator
    qi = pl.program_id(1)
    kv = pl.program_id(2)

    @pl.when(kv == 0)
    def _init():
        m_sc[...] = jnp.full_like(m_sc, -jnp.inf)
        l_sc[...] = jnp.zeros_like(l_sc)
        acc_sc[...] = jnp.zeros_like(acc_sc)

    # Causal tile skip: with tq == tk, key tiles with kv > qi are entirely in
    # the future for every row of this query tile -> skip both matmuls and
    # the softmax pass.
    @pl.when(kv <= qi)
    def _compute():
        q = q_ref[0]                                          # (tq, d_pad)
        k = k_ref[0]                                          # (tk, d_pad)
        # contract last dim of both operands: no k.T relayout
        s = lax.dot_general(q, k, (((1,), (1,)), ((), ())),
                            preferred_element_type=jnp.float32)   # (tq, tk)

        # causal mask from tiny (tq,1)/(1,tk) iotas (no full int32 slabs).
        row = qi * tq + lax.broadcasted_iota(jnp.int32, (tq, 1), 0)
        col = kv * tk + lax.broadcasted_iota(jnp.int32, (1, tk), 1)
        # -inf is safe: every row of a processed tile has >= 1 unmasked column.
        s = jnp.where(col > row, -jnp.inf, s)

        m_prev = m_sc[...]
        m_new = jnp.maximum(m_prev, jnp.max(s, axis=-1, keepdims=True))
        alpha = jnp.exp(m_prev - m_new)                       # (tq, 1)
        p = jnp.exp(s - m_new)                                # (tq, tk) f32

        # denominator uses the UN-dropped probabilities (torch drops after softmax)
        l_sc[...] = alpha * l_sc[...] + jnp.sum(p, axis=-1, keepdims=True)

        if dropout_rate > 0.0:
            # TODO(synk): RNG stream differs from torch.nn.Dropout; only the
            # Bernoulli keep-mask + 1/(1-p) rescale semantics are reproduced.
            tile = (pl.program_id(0) * pl.num_programs(1) + qi) * pl.num_programs(2) + kv
            pltpu.prng_seed(seed_ref[0] ^ (tile * jnp.int32(-1640531527)))
            bits = pltpu.bitcast(pltpu.prng_random_bits((tq, tk)), jnp.uint32)
            thr = jnp.uint32(min(int(round(dropout_rate * 2.0 ** 32)), 2 ** 32 - 1))
            # fused dropout-select + bf16 cast; 1/(1-p) rescale deferred to output
            p_op = jnp.where(bits >= thr, p, 0.0).astype(jnp.bfloat16)
        else:
            p_op = p.astype(jnp.bfloat16)

        acc_sc[...] = alpha * acc_sc[...] + jnp.dot(
            p_op, v_ref[0], preferred_element_type=jnp.float32)
        m_sc[...] = m_new

    @pl.when(kv == pl.num_programs(2) - 1)
    def _finalize():
        # deferred normalization: one (tq, d_pad)-wide multiply instead of a
        # (tq, T)-wide one; dropout 1/(1-p) rescale folded in here as well.
        inv = pl.reciprocal(l_sc[...], approx=True)
        if dropout_rate > 0.0:
            inv = inv * (1.0 / (1.0 - dropout_rate))
        o_ref[0] = (acc_sc[...] * inv).astype(o_ref.dtype)


# ---------------------------------------------------------------------------
# Wrapper
# ---------------------------------------------------------------------------
def _vmem_limit(block_bytes, scratch_bytes=0):
    # blocks are double-buffered by the pipeline; generous headroom, capped so
    # the request never exceeds v7x physical VMEM (64 MiB / TC).
    need = 2 * (2 * block_bytes + scratch_bytes) + (2 << 20)
    return int(min(64 << 20, max(4 << 20, need)))


def causal_attention(x, w_query, w_key, w_value, *, dropout_rate=0.0, seed=0):
    """x: (B, T, d_in); w_*: torch nn.Linear layout (d_out, d_in). Returns (B, T, d_out)."""
    B, T, d_in = x.shape
    d_out = w_query.shape[0]
    scale = 1.0 / math.sqrt(d_out)

    # lane-dense padded head width (multiple of 128); padded columns are zero.
    d_pad = ((d_out + 127) // 128) * 128

    def prep(w):  # (d_out, d_in) -> (d_in, d_pad), zero-padded
        wt = jnp.asarray(w, jnp.float32).T
        return jnp.pad(wt, ((0, 0), (0, d_pad - d_out)))

    # fused [Wq*scale | Wk | Wv]; softmax scale folded into the Q slice.
    w_qkv = jnp.concatenate(
        [prep(w_query) * scale, prep(w_key), prep(w_value)], axis=1
    ).astype(jnp.bfloat16)                                    # (d_in, 3*d_pad)

    xb = x.astype(jnp.bfloat16)

    # ---- stage 1: project Q|K|V once (no per-query-tile re-projection) ------
    if T <= 256:
        tm = T
    else:
        tm = 256 if T % 256 == 0 else 128
    assert T % tm == 0, "sequence length must be a multiple of the tile size"
    # TODO(synk): tile the d_in (contraction) axis too for very large d_in.

    proj_blk = (tm * d_in + d_in * 3 * d_pad + tm * 3 * d_pad) * 2
    qkv = pl.pallas_call(
        _qkv_proj_kernel,
        out_shape=jax.ShapeDtypeStruct((B, T, 3 * d_pad), jnp.bfloat16),
        grid_spec=pltpu.PrefetchScalarGridSpec(
            num_scalar_prefetch=0,
            grid=(B, T // tm),
            in_specs=[
                pl.BlockSpec((1, tm, d_in), lambda b, i: (b, i, 0)),
                pl.BlockSpec((d_in, 3 * d_pad), lambda b, i: (0, 0)),
            ],
            out_specs=pl.BlockSpec((1, tm, 3 * d_pad), lambda b, i: (b, i, 0)),
        ),
        compiler_params=pltpu.CompilerParams(
            dimension_semantics=("parallel", "parallel"),
            vmem_limit_bytes=_vmem_limit(proj_blk)),
        cost_estimate=pl.CostEstimate(
            flops=int(2 * B * T * d_in * 3 * d_pad),
            transcendentals=0,
            bytes_accessed=int(xb.size * 2 + w_qkv.size * 2 + B * T * 3 * d_pad * 2)),
    )(xb, w_qkv)

    # ---- stage 2: flash attention over the projected slab --------------------
    tq = T if T <= 128 else 128
    tk = tq                               # tq == tk keeps the causal skip exact
    assert T % tq == 0, "sequence length must be a multiple of the tile size"
    nq = T // tq
    nk = T // tk

    seed_arr = jnp.array([seed], dtype=jnp.int32)
    kernel = functools.partial(
        _flash_attn_kernel, dropout_rate=float(dropout_rate), tq=tq, tk=tk)

    n_tiles = nq * (nq + 1) // 2          # causal tiles actually computed per batch
    flash_cost = pl.CostEstimate(
        flops=int(4 * B * n_tiles * tq * tk * d_pad),
        transcendentals=int(B * n_tiles * tq * tk),
        bytes_accessed=int(B * nq * (tq + 2 * T) * d_pad * 2 + B * T * d_pad * 2),
    )
    flash_blk = (tq * d_pad + 2 * tk * d_pad + tq * d_pad) * 2       # q+k+v+out bf16
    flash_scratch = (2 * tq * 128 + tq * d_pad) * 4                   # m, l, acc f32

    out = pl.pallas_call(
        kernel,
        out_shape=jax.ShapeDtypeStruct((B, T, d_pad), jnp.bfloat16),
        grid_spec=pltpu.PrefetchScalarGridSpec(
            num_scalar_prefetch=1,                                    # seed -> SMEM
            grid=(B, nq, nk),
            in_specs=[
                pl.BlockSpec((1, tq, d_pad), lambda b, qi, kv, sref: (b, qi, 0)),  # Q
                pl.BlockSpec((1, tk, d_pad), lambda b, qi, kv, sref: (b, kv, 1)),  # K
                pl.BlockSpec((1, tk, d_pad), lambda b, qi, kv, sref: (b, kv, 2)),  # V
            ],
            out_specs=pl.BlockSpec((1, tq, d_pad), lambda b, qi, kv, sref: (b, qi, 0)),
            scratch_shapes=[
                pltpu.VMEM((tq, 1), jnp.float32),        # running max m
                pltpu.VMEM((tq, 1), jnp.float32),        # running denominator l
                pltpu.VMEM((tq, d_pad), jnp.float32),    # unnormalized accumulator
            ],
        ),
        compiler_params=pltpu.CompilerParams(
            # only the batch axis 'parallel': keeps the m/l/acc carry on one
            # core while still sharding B across v7x's two TensorCores.
            dimension_semantics=("parallel", "arbitrary", "arbitrary"),
            vmem_limit_bytes=_vmem_limit(flash_blk, flash_scratch)),
        cost_estimate=flash_cost,
    )(seed_arr, qkv, qkv, qkv)

    # strip lane padding; kernel writes bf16 (halved HBM writeback), restore caller dtype
    return out[..., :d_out].astype(x.dtype)


# ---------------------------------------------------------------------------
# Reference + self-test
# ---------------------------------------------------------------------------
def _reference(x, w_query, w_key, w_value):
    d_out = w_query.shape[0]
    q = jnp.einsum("btd,od->bto", x, w_query)
    k = jnp.einsum("btd,od->bto", x, w_key)
    v = jnp.einsum("btd,od->bto", x, w_value)
    s = jnp.einsum("bqo,bko->bqk", q, k)
    T = x.shape[1]
    mask = jnp.triu(jnp.ones((T, T), bool), k=1)
    s = jnp.where(mask[None], -jnp.inf, s)
    w = jax.nn.softmax(s / math.sqrt(d_out), axis=-1)
    return jnp.einsum("bqk,bko->bqo", w, v)


if __name__ == "__main__":
    B, T, d_in, d_out = 2, 8, 16, 32
    dropout = 0.0  # eval-mode / p=0; kernel supports p>0 with its own RNG stream

    key = jax.random.PRNGKey(0)
    kx, kq, kk, kv = jax.random.split(key, 4)

    x = jax.random.normal(kx, (B, T, d_in), dtype=jnp.float32)
    # torch nn.Linear weight layout: (d_out, d_in), init ~ U(-1/sqrt(d_in), 1/sqrt(d_in))
    bound = 1.0 / math.sqrt(d_in)
    w_query = jax.random.uniform(kq, (d_out, d_in), jnp.float32, -bound, bound)
    w_key = jax.random.uniform(kk, (d_out, d_in), jnp.float32, -bound, bound)
    w_value = jax.random.uniform(kv, (d_out, d_in), jnp.float32, -bound, bound)

    out = causal_attention(x, w_query, w_key, w_value, dropout_rate=dropout, seed=0)
    out = jax.block_until_ready(out)

    ref = _reference(x, w_query, w_key, w_value)
    assert out.shape == (B, T, d_out)
    # bf16 operand/output pipeline (f32 MXU accumulation) -> bf16-level tolerance
    assert jnp.allclose(out, ref, atol=5e-2, rtol=5e-2), "mismatch vs reference"
    print("KERNEL_OK")
</pallas_src>

<mosaic_0001>
module attributes {stable_mosaic.version = 11 : i64} {
  func.func @_qkv_proj_kernel(%arg0: i32, %arg1: i32, %arg2: memref<1x8x16xbf16, #tpu.memory_space<vmem>>, %arg3: memref<16x384xbf16, #tpu.memory_space<vmem>>, %arg4: memref<1x8x384xbf16, #tpu.memory_space<vmem>>) attributes {dimension_semantics = [#tpu.dimension_semantics<parallel>, #tpu.dimension_semantics<parallel>], iteration_bounds = array<i64: 2, 1>, scalar_prefetch = 0 : i64, scratch_operands = 0 : i64, tpu.core_type = #tpu.core_type<tc>, window_params = [{transform_indices = @transform_0, window_bounds = array<i64: 1, 8, 16>}, {pipeline_mode = #tpu.pipeline_mode<synchronous>, transform_indices = @transform_1, window_bounds = array<i64: 16, 384>}, {transform_indices = @transform_2, window_bounds = array<i64: 1, 8, 384>}]} {
    %c0 = arith.constant 0 : index
    %c0_0 = arith.constant 0 : index
    %c0_1 = arith.constant 0 : index
    %0 = vector.load %arg2[%c0, %c0_0, %c0_1] : memref<1x8x16xbf16, #tpu.memory_space<vmem>>, vector<1x8x16xbf16>
    %1 = vector.shape_cast %0 : vector<1x8x16xbf16> to vector<8x16xbf16>
    %c0_2 = arith.constant 0 : index
    %c0_3 = arith.constant 0 : index
    %2 = vector.load %arg3[%c0_2, %c0_3] : memref<16x384xbf16, #tpu.memory_space<vmem>>, vector<16x384xbf16>
    %cst = arith.constant dense<0.000000e+00> : vector<8x384xf32>
    %3 = tpu.matmul %1, %2, %cst {dimension_numbers = #tpu.dot_dimension_numbers<[1], [0], [0], [1], [0, 0, 1, 1], [], []>} : vector<8x16xbf16>, vector<16x384xbf16>, vector<8x384xf32> -> vector<8x384xf32>
    %4 = arith.truncf %3 : vector<8x384xf32> to vector<8x384xbf16>
    %c0_4 = arith.constant 0 : index
    %c0_5 = arith.constant 0 : index
    %c0_6 = arith.constant 0 : index
    %5 = vector.load %arg4[%c0_4, %c0_5, %c0_6] : memref<1x8x384xbf16, #tpu.memory_space<vmem>>, vector<1x8x384xbf16>
    %6 = vector.shape_cast %5 : vector<1x8x384xbf16> to vector<8x384xbf16>
    %7 = vector.shape_cast %4 : vector<8x384xbf16> to vector<1x8x384xbf16>
    tpu.vector_store %arg4[%c0_4, %c0_5, %c0_6], %7 {strides = array<i32>} : memref<1x8x384xbf16, #tpu.memory_space<vmem>>, vector<1x8x384xbf16>,
    return
  }
  func.func @transform_0(%arg0: i32, %arg1: i32) -> (i32, i32, i32) {
    %c0_i32 = arith.constant 0 : i32
    %c0_i32_0 = arith.constant 0 : i32
    return %arg0, %arg1, %c0_i32 : i32, i32, i32
  }
  func.func @transform_1(%arg0: i32, %arg1: i32) -> (i32, i32) {
    %c0_i32 = arith.constant 0 : i32
    %c0_i32_0 = arith.constant 0 : i32
    %c0_i32_1 = arith.constant 0 : i32
    return %c0_i32, %c0_i32_0 : i32, i32
  }
  func.func @transform_2(%arg0: i32, %arg1: i32) -> (i32, i32, i32) {
    %c0_i32 = arith.constant 0 : i32
    %c0_i32_0 = arith.constant 0 : i32
    return %arg0, %arg1, %c0_i32 : i32, i32, i32
  }
}

</mosaic_0001>

<bundles_post_ra>
// kernel: tpu_custom_call.1
= control target key start
LH: loop header
LB: loop body
LE: loop exit
PB: predicated region body
PF: predicated region fallthrough
CT: control target
= control target key end

     0   :  { %7 = vsyncpa [#allocation3], 0  ;;  %s920_s0 = inlined_call_operand.hbm [shape: bf16[2,8,16], index: 0, kind: input, shape index: {}]   ;;  %s921_s1 = inlined_call_operand.hbm [shape: bf16[16,384], index: 1, kind: input, shape index: {}]   ;;  %s922_s2 = inlined_call_operand.hbm [shape: bf16[2,8,384], index: 2, kind: output, shape index: {}]  }
   0x1   :  { %9 = vsyncpa [#allocation3 + $0x1], 0 }
   0x2   :  { %10 = vsyncpa [#allocation6], 0 }
   0x3   :  { %11 = vsyncpa [#allocation4], 0 }
   0x4   :  { %13 = vsyncpa [#allocation4 + $0x1], 0  ;;  %s705_s9 = smov 0   ;;  %s707_s10 = smov 0  }
   0x5   :  { %s709_s11 = smov 0   ;;  %s711_s12 = smov 0  }
   0x6   :  { %s713_s13 = smov 0   ;;  %s715_s14 = smov 0  }
   0x7 LB: > { %s422_s15 = sadd.s32 4294967295, %s680_s14   ;;  %s423_s16 = sadd.s32 4294967294, %s680_s14   ;;  %s680_s14 = sphi %s715_s14, %s19_s14   ;;  %s676_s13 = sphi %s713_s13, %s946_s13   ;;  %s672_s12 = sphi %s711_s12, %s945_s12   ;;  %s668_s11 = sphi %s709_s11, %s944_s11   ;;  %s664_s10 = sphi %s707_s10, %s943_s10   ;;  %s660_s9 = sphi %s705_s9, %s942_s9  }
   0x8   : > { %p53_p0 = scmp.ne.s32.totalorder %s664_s10, %s660_s9  ;;  %p739_p1 = scmp.eq.s32.totalorder %s422_s15, 0 }
   0x9   : > { %p743_p2 = scmp.eq.s32.totalorder %s422_s15, 1  ;;  %p106_p3 = scmp.eq.s32.totalorder %s423_s16, 1 }
   0xa   : > { %s927_s17 = scalar_select %p739_p1, 1, 0 }
   0xb   : > { %s928_s18 = scalar_select %p743_p2, 1, 0 }
   0xc   : > { %p749_p4 = por %p739_p1, %p53_p0  ;;  %p424_p5 = scmp.ge.s32.totalorder %s680_s14, 1 }
   0xd   : > { %p754_p6 = por %p106_p3, %p53_p0  ;;  %p113_p7 = scmp.lt.s32.totalorder %s680_s14, 3 }
   0xe   : > { %s929_s19 = scalar_select %p749_p4, 1, 0 }
   0xf   : > { %s930_s20 = scalar_select %p754_p6, 1, 0 }
  0x10   : > { %p759_p8 = pnand %p424_p5, %p113_p7  ;;  %s682_s22 = smov [#allocation5]  }
  0x11   : > { %s125_s23 = sshll.u32 %s682_s22, 4  ;;  %s31_s25 = sadd.s32 1, %s676_s13  ;;  %s126_s23 = int_to_ptr.vmem [resolvable:$true] %s125_s23 }
  0x12   : > { %s931_s21 = scalar_select %p759_p8, 1, 0 }
  0x13   : > { %p462_p9 = pneg %p759_p8  ;;  %s536_s28 = scalar_lea.hbm %s921_s1, 384 }
  0x14   : > { %p537_p12 = scmp.ne.s32.totalorder %s921_s1, %s536_s28  ;;  %p543_p5 = scmp.lt.u32.totalorder %s536_s28, %s921_s1 }
  0x15   : > { %p768_p11 = pnand %p462_p9, %p739_p1 }
  0x17   : > { %p538_p13 = pneg %p768_p11 }
  0x19   : > { %p539_p0 = pnand %p538_p13, %p537_p12 }
  0x1b   : > { %p540_p3 = pneg %p539_p0 }
  0x1d   : > { %p545_p7 = pnand %p543_p5, %p540_p3 }
  0x1f   : > { %548 = shalt.err (!%p545_p7)
}
  0x20   : > { %s549_s5 = scalar_lea.vmem %s126_s23, 384  ;;  %p557_p1 = scmp.lt.s32.totalorder %s126_s23, %s126_s23 }
  0x21   : > { %p550_p9 = scmp.ne.s32.totalorder %s126_s23, %s549_s5  ;;  %p558_p4 = scmp.lt.s32.totalorder %s549_s5, %s549_s5 }
  0x23   : > { %p552_p10 = pnand %p550_p9, %p538_p13  ;;  %p559_p8 = por %p558_p4, %p557_p1 }
  0x25   : > { %p553_p6 = pneg %p552_p10 }
  0x27   : > { %p560_p2 = pnand %p559_p8, %p553_p6 }
  0x29   : > { %563 = shalt.err (!%p560_p2)
}
  0x2a   : > { %s683_s6 = smov 192   ;;  %s684_s7 = smov 12  }
  0x2b   : > { %465 = dma.hbm_to_vmem [thread:$0]  (!%p768_p11), %s921_s1, 384, %s126_s23, [#allocation6], %s683_s6, %s683_s6, %s684_s7  }
  0x2c   : > { %p33_p1 = scmp.ge.s32.totalorder %s31_s25, 2  ;;  %s40_s16 = sadd.s32 1, %s668_s11 }
  0x2d   : > { %p47_p2 = scmp.ne.s32.totalorder %s668_s11, %s664_s10  ;;  %p48_p4 = scmp.eq.s32.totalorder %s680_s14, 0 }
  0x2e   : > { %s948_s25 = smov (%p33_p1, %s31_s25), 0  ;;  %p934_p8 = scmp.ne.s32.totalorder %s928_s18, 0 }
  0x2f   : > { %p795_p6 = por %p48_p4, %p47_p2  ;;  %s35_s24 = ssub.s32 %s676_s13, %s948_s25 }
  0x30   : > { %p801_p10 = por %p934_p8, %p47_p2  ;;  %p475_p12 = scmp.lt.s32.totalorder %s680_s14, 2 }
  0x31   : > { %p38_p11 = scmp.eq.s32.totalorder %s35_s24, 0  ;;  %s139_s23 = sand.u32 1, %s668_s11  }
  0x32   : > { %s427_s27 = sshll.u32 %s139_s23, 2  ;;  %s428_s29 = sshll.u32 %s676_s13, 6 }
  0x33   : > { %s810_s28 = scalar_select %p38_p11, %s668_s11, %s40_s16  }
  0x34   : > { %s816_s4 = scalar_lea.hbm %s920_s0, %s428_s29  ;;  %s143_s18 = scalar_lea.vmem [#allocation2], %s427_s27 }
  0x35   : > { %s151_s5 = sshll.u32 %s143_s18, 4  ;;  %p822_p13 = pnand %p475_p12, %p795_p6  ;;  %s818_s5 = int_to_ptr.vmem [resolvable:$true] %s151_s5 }
  0x36   : > { %s140_s7 = scalar_lea.sflag [#allocation3], %s139_s23  ;;  %s564_s8 = scalar_lea.hbm %s816_s4, 64 }
  0x37   : > { %p565_p0 = scmp.ne.s32.totalorder %s816_s4, %s564_s8  ;;  %p566_p3 = pneg %p822_p13 }
  0x38   : > { %s569_s24 = scalar_lea.hbm %s920_s0, 128  ;;  %p570_p9 = scmp.lt.u32.totalorder %s816_s4, %s920_s0 }
  0x39   : > { %p567_p5 = pnand %p566_p3, %p565_p0  ;;  %p571_p1 = scmp.lt.u32.totalorder %s569_s24, %s564_s8 }
  0x3a   : > { %p573_p4 = scmp.lt.u32.totalorder %s564_s8, %s816_s4 }
  0x3b   : > { %p568_p7 = pneg %p567_p5  ;;  %p572_p2 = por %p571_p1, %p570_p9 }
  0x3d   : > { %p574_p6 = por %p573_p4, %p572_p2 }
  0x3f   : > { %p575_p8 = pnand %p574_p6, %p568_p7 }
  0x41   : > { %578 = shalt.err (!%p575_p8)
}
  0x42   : > { %s579_s23 = scalar_lea.vmem %s818_s5, 64  ;;  %s685_s29 = smov [#allocation2]  }
  0x43   : > { %p580_p12 = scmp.ne.s32.totalorder %s818_s5, %s579_s23  ;;  %s584_s30 = sshll.u32 %s685_s29, 4  ;;  %s585_s30 = int_to_ptr.vmem [resolvable:$false] %s584_s30 }
  0x44   : > { %s586_s3 = scalar_lea.vmem %s585_s30, 128  ;;  %p587_p5 = scmp.lt.s32.totalorder %s818_s5, %s585_s30 }
  0x45   : > { %p582_p11 = pnand %p580_p12, %p566_p3  ;;  %p588_p9 = scmp.lt.s32.totalorder %s586_s3, %s579_s23 }
  0x47   : > { %p583_p0 = pneg %p582_p11  ;;  %p589_p1 = por %p588_p9, %p587_p5 }
  0x49   : > { %p590_p2 = pnand %p589_p1, %p583_p0 }
  0x4b   : > { %593 = shalt.err (!%p590_p2)
}
  0x4c   : > { %469 = dma.hbm_to_vmem [thread:$0]  (!%p822_p13), %s816_s4, 64, %s818_s5, %s140_s7  }
  0x4d   : > { %p937_p7 = scmp.ne.s32.totalorder %s931_s21, 0 }
  0x4e   : > { %s854_s18 = sand.u32 (!%p937_p7), 1, %s664_s10   ;;  %p938_p3 = scmp.ne.s32.totalorder (!%p937_p7), %s929_s19, 0 }
  0x4f   : > { %160 = sbr.rel (%p937_p7) target bundleno = 325 (0x145), region = 28  ;;  %s430_s8 = sshll.u32 (!%p937_p7), %s854_s18, 2 }
  0x50   : > { %s163_s15 = scalar_lea.sflag (!%p937_p7), [#allocation3], %s854_s18  ;;  %s166_s16 = scalar_lea.vmem (!%p937_p7), [#allocation2], %s430_s8 }
  0x56   : > { %647 = dma.done.wait (%p938_p3), %s163_s15, 64  }
  0x57   : > { %649 = vsyncadd (%p938_p3), %s163_s15, 4294967232  ;;  %p939_p4 = scmp.ne.s32.totalorder %s927_s17, 0 }
  0x59   : > { %651 = dma.done.wait (%p939_p4), [#allocation6], 384  }
  0x5a   : > { %653 = vsyncadd (%p939_p4), [#allocation6], 4294966912  ;;  %v686_v0 = vmov 0.0   ;;  %vm687_vm0 = vmmov 0   ;;  %v688_v1 = vmov 0   ;;  %vm213_vm1 = vcmask 130048  }
  0x5b   : > { %446 = vmatprep.subr.bf16.mxu1 %v686_v0  ;;  %448 = vmatprep.mubr.msk.bf16.mxu1 %vm687_vm0, %v686_v0  ;;  %v532_v2 = vld [vmem:[#allocation5 + $0x4] ss:$12 sps:$4 sm:$0xff]   ;;  %v534_v3 = vld [vmem:[#allocation5 + $0x8] ss:$12 sps:$4 sm:$0xff]   ;;  %v535_v4 = vld [vmem:[#allocation5] ss:$12 sps:$4 sm:$0xff]  }
  0x5c   : > { %249 = vmatprep.mubr.bf16.mxu0 %v688_v1  ;;  %217 = vmatprep.subr.bf16.mxu0 %v532_v2  ;;  %v192_v5 = vld [vmem:[%s166_s16] sm:$0xf]  ;;  %s452_s17 = smul.u32 12, %s854_s18  ;;  %s689_s22 = smov [#allocation7]  }
  0x5d   : > { %447 = vmatpush3.bf16.msra.mxu1 %v534_v3  ;;  %218 = vmatpush1.bf16.msra.mxu0 %v535_v4  ;;  %s453_s19 = smul.u32 192, %s672_s12  ;;  %s314_s12 = scalar_lea.sflag [#allocation4], %s854_s18 }
  0x5e   : > { %s190_s21 = scalar_lea.vmem [#allocation7], %s452_s17  ;;  %s598_s27 = sshll.u32 %s689_s22, 4  ;;  %s599_s27 = int_to_ptr.vmem [resolvable:$false] %s598_s27 }
  0x5f   : > { %s330_s4 = sshll.u32 %s190_s21, 4  ;;  %s871_s7 = scalar_lea.hbm %s922_s2, %s453_s19  ;;  %s873_s4 = int_to_ptr.vmem [resolvable:$true] %s330_s4 }
  0x60   : > { %449 = vmatmul.mubr.msk.bf16.vlgmr.msra.gmra.mrb[0].mxu1 %vm213_vm1, %v192_v5  ;;  %435 = vmatmul.mubr.msk.bf16.vlgmr.msra.gmra.mrb[0].mxu0 %vm213_vm1, %v192_v5  ;;  %s594_s24 = scalar_lea.vmem %s873_s4, 192  ;;  %s600_s23 = scalar_lea.vmem %s599_s27, 384 }
  0x61   : > { %p595_p13 = scmp.ne.s32.totalorder %s873_s4, %s594_s24  ;;  %p601_p12 = scmp.lt.s32.totalorder %s873_s4, %s599_s27 }
  0x62   : > { %p602_p11 = scmp.lt.s32.totalorder %s600_s23, %s594_s24 }
  0x63   : > { %p596_p6 = pnand %p595_p13, %p801_p10 }
  0x64   : > { %p603_p0 = por %p602_p11, %p601_p12 }
  0x65   : > { %p597_p8 = pneg %p596_p6 }
  0x67   : > { %p604_p5 = pnand %p603_p0, %p597_p8 }
 0x133   : > { %v292_v6 = vpop.f32.mrb[0].mxu1  ;;  %v251_v8 = vpop.f32.mrb[0].mxu0 }
 0x134   : > { %v443_v7 = vpack.c.bf16 %v292_v6, %v292_v6  ;;  %v450_v9 = vpop.f32.mrb[1].mxu1  ;;  %v253_v10 = vpop.f32.mrb[1].mxu0 }
 0x135   : > { %v295_v11 = vpop.f32.mrb[2].mxu1  ;;  %v442_v12 = vpack.c.bf16 %v253_v10, %v251_v8  ;;  %v255_v13 = vpop.f32.mrb[2].mxu0 }
 0x136   : > { %312 = vst [vmem:[%s190_s21 + $0x8] sm:$0xf] %v443_v7  ;;  %v451_v14 = vpop.f32.mrb[3].mxu1  ;;  %v256_v15 = vpop.f32.mrb[3].mxu0 }
 0x137   : > { %311 = vst [vmem:[%s190_s21] sm:$0xff] %v442_v12 }
 0x138   : > { %607 = shalt.err (!%p604_p5)
}
 0x139   : > { %s608_s29 = scalar_lea.hbm %s871_s7, 192  ;;  %s612_s18 = scalar_lea.hbm %s922_s2, 384 }
 0x13a   : > { %p609_p9 = scmp.ne.s32.totalorder %s871_s7, %s608_s29  ;;  %p613_p7 = scmp.lt.u32.totalorder %s871_s7, %s922_s2 }
 0x13b   : > { %p614_p3 = scmp.lt.u32.totalorder %s612_s18, %s608_s29  ;;  %p616_p13 = scmp.lt.u32.totalorder %s608_s29, %s871_s7 }
 0x13c   : > { %p610_p1 = pnand %p609_p9, %p801_p10 }
 0x13d   : > { %p615_p4 = por %p614_p3, %p613_p7 }
 0x13e   : > { %p611_p2 = pneg %p610_p1 }
 0x13f   : > { %p617_p6 = por %p616_p13, %p615_p4 }
 0x141   : > { %p618_p8 = pnand %p617_p6, %p611_p2 }
 0x143   : > { %621 = shalt.err (!%p618_p8)
}
 0x144   : > { %460 = dma.vmem_to_hbm [thread:$0]  (%p801_p10), %s873_s4, 192, %s871_s7, %s314_s12  }
 0x145 PF: > { %s342_s16 = sand.u32 1, %s660_s9   ;;  %p940_p12 = scmp.ne.s32.totalorder %s930_s20, 0 }
 0x146   : > { %p941_p11 = scmp.ge.s32.totalorder %s680_s14, 2  ;;  %s343_s17 = scalar_lea.sflag [#allocation4], %s342_s16 }
 0x148   : > { %p471_p0 = pnand %p941_p11, %p940_p12 }
 0x14a   : > { %655 = dma.done.wait (!%p471_p0), %s343_s17, 192  }
 0x14b   : > { %657 = vsyncadd (!%p471_p0), %s343_s17, 4294967104  ;;  %s19_s14 = sadd.s32 1, %s680_s14   ;;  %s942_s9 = smov %s664_s10 }
 0x14c   : > { %p16_p5 = scmp.ge.s32.totalorder %s19_s14, 4   ;;  %s943_s10 = smov %s668_s11 }
 0x14d   : > { %s944_s11 = smov %s810_s28  ;;  %s945_s12 = smov %s676_s13 }
 0x14e   : > { %s946_s13 = smov %s948_s25  ;;  %18 = sbr.rel (!%p16_p5) target bundleno = 7 (0x7), region = 77 }
 0x155   :  { %348 = vsyncpa [#allocation3], 1 }
 0x156   :  { %350 = vsyncpa [#allocation3 + $0x1], 1 }
 0x157   :  { %351 = vsyncpa [#allocation6], 1 }
 0x158   :  { %352 = vsyncpa [#allocation4], 1 }
 0x159   :  { %354 = vsyncpa [#allocation4 + $0x1], 1 }

</bundles_post_ra>
